<compile_context>
chip_gen: v7x
topology: tpu7x:2x2x1
jax: 0.10.0
libtpu: 0.0.40
codegen_flags: <defaults>
</compile_context>

<pallas_src>
import math

import jax
import jax.numpy as jnp
import numpy as np
from jax.experimental import pallas as pl
from jax.experimental.pallas import tpu as pltpu

DIM = 512            # module default; multiple of 128 -> lane-dense output
ACTION_SIZE = 8
MAX_DWT_DEPTH = 12
DWT_CHANNELS = 3
N_FILTERS = 4
N_VOCAB = 16         # 2 ** 4
REC_BITS = 16

# Column offsets of each feature segment inside the fused K=128 activation.
OFF_ACTION = 0
OFF_CHANNEL = OFF_ACTION + ACTION_SIZE      # 8
OFF_FILTER = OFF_CHANNEL + DWT_CHANNELS     # 11
OFF_DEPTH = OFF_FILTER + N_FILTERS          # 15
OFF_N = OFF_DEPTH + MAX_DWT_DEPTH           # 27
OFF_BITS = OFF_N + N_VOCAB                  # 43
K_TOTAL = OFF_BITS + REC_BITS               # 59
K_PAD = 128                                 # pad to MXU-friendly depth

_TWO_PI = 6.283185307179586
_INV_TWO_PI = 1.0 / _TWO_PI
# Even Taylor coefficients of cos(r) in u = r^2 up to u^7 (degree 14);
# truncation error <= pi^16/16! ~ 4.3e-6 on |r| <= pi.
_COS_EVEN_COEFFS = np.array(
    [(-1.0) ** k / math.factorial(2 * k) for k in range(8)], np.float64)


def spiht_embed_kernel(ids_ref, table_ref, aux_ref, coef_ref, out_ref):
    f32 = jnp.float32
    ids = ids_ref[...]                                        # (tN, 8) int32

    # pad tokens: rows whose whole feature vector is zero
    pad_mask = jnp.all(ids == 0, axis=-1, keepdims=True)      # (tN, 1) bool

    # --- fused 0/1 activation: one-hot segments + 16-bit unpack ------------
    # Lane-invariant pieces are built once at (1, K_PAD) and broadcast.
    lane = jax.lax.broadcasted_iota(jnp.int32, (1, K_PAD), 1)
    bit_pos = lane - OFF_BITS
    in_bits = (bit_pos >= 0) & (bit_pos < REC_BITS)
    bit_mask = jnp.where(in_bits, 1 << jnp.where(in_bits, bit_pos, 0), 0)

    onehot = (
        (lane == ids[:, 0:1] + OFF_ACTION)        # action_embed
        | (lane == ids[:, 3:4] + OFF_CHANNEL)     # dwt_channel_embed
        | (lane == ids[:, 4:5] + OFF_FILTER)      # dwt_filter_embed
        | (lane == ids[:, 5:6] + OFF_DEPTH)       # dwt_depth_embed
        | (lane == ids[:, 6:7] + OFF_N)           # n_emb
    )
    rec = ids[:, 7:8] + 2 ** 15                               # (tN, 1)
    bit_set = (rec & bit_mask) != 0                           # (tN, 128)
    act = (onehot | bit_set).astype(jnp.bfloat16)             # exact 0/1

    # --- fused embedding matmul: 2 bf16 MXU passes (hi + lo weight split) --
    emb = jnp.dot(act, table_ref[0], preferred_element_type=f32)
    emb = emb + jnp.dot(act, table_ref[1], preferred_element_type=f32)

    # --- CAPE2d positional embedding, lane-dense (no cos/sin concat) -------
    # aux rows: 0 = (pi/1e5)*w_x (halves duplicated), 1 = (pi/1e5)*w_y,
    #           2 = phase offset (0 | -pi/2), 3 = pad-token embedding.
    x = ids[:, 1:2].astype(f32)                               # raw height ids
    y = ids[:, 2:3].astype(f32)                               # raw width ids
    phase = x * aux_ref[0:1, :] + y * aux_ref[1:2, :] + aux_ref[2:3, :]

    # Cheap bounded-range cosine: |phase| <= ~65 rad, reduce once to
    # [-pi, pi], evaluate an even degree-14 polynomial in r^2.
    # pos_scale is pre-folded into coef_ref, so no trailing scale multiply.
    n = jnp.floor(phase * np.float32(_INV_TWO_PI) + np.float32(0.5))
    r = phase - n * np.float32(_TWO_PI)
    u = r * r
    p = coef_ref[7] * u + coef_ref[6]
    p = p * u + coef_ref[5]
    p = p * u + coef_ref[4]
    p = p * u + coef_ref[3]
    p = p * u + coef_ref[2]
    p = p * u + coef_ref[1]
    p = p * u + coef_ref[0]
    emb = emb + p

    pad_row = aux_ref[3:4, :]                                 # (1, dim)
    out_ref[...] = jnp.where(pad_mask, pad_row, emb).astype(out_ref.dtype)


def make_params(dim=DIM):
    key = jax.random.PRNGKey(0)
    ks = jax.random.split(key, 7)
    half = dim // 2
    rho = 10.0 ** jnp.linspace(0.0, 1.0, half)
    w_x = rho * jnp.cos(jnp.arange(half, dtype=jnp.float32))
    w_y = rho * jnp.sin(jnp.arange(half, dtype=jnp.float32))
    return dict(
        wxy=jnp.stack([w_x, w_y]).astype(jnp.float32),                 # (2, half)
        pos_scale=jnp.full((1, 1), 1.0 / dim ** 0.5, jnp.float32),     # scalar
        action=jax.random.normal(ks[0], (ACTION_SIZE, dim), jnp.float32),
        channel=jax.random.normal(ks[1], (DWT_CHANNELS, dim), jnp.float32),
        filt=jax.random.normal(ks[2], (N_FILTERS, dim), jnp.float32),
        depth=jax.random.normal(ks[3], (MAX_DWT_DEPTH, dim), jnp.float32),
        n=jax.random.normal(ks[4], (N_VOCAB, dim), jnp.float32),
        # PyTorch Linear(16, dim, bias=False) weight is (dim, 16); store W^T
        rec_w_t=jax.random.normal(ks[5], (REC_BITS, dim), jnp.float32) * 0.25,
        pad=jax.random.normal(ks[6], (1, dim), jnp.float32),
    )


def _pack_kernel_weights(params):
    """Stack tables into a bf16 hi/lo (2,128,dim) matrix + (4,dim) aux rows."""
    dim = params["action"].shape[1]
    half = dim // 2
    table = jnp.zeros((K_PAD, dim), jnp.float32)
    table = table.at[OFF_ACTION:OFF_ACTION + ACTION_SIZE].set(params["action"])
    table = table.at[OFF_CHANNEL:OFF_CHANNEL + DWT_CHANNELS].set(params["channel"])
    table = table.at[OFF_FILTER:OFF_FILTER + N_FILTERS].set(params["filt"])
    table = table.at[OFF_DEPTH:OFF_DEPTH + MAX_DWT_DEPTH].set(params["depth"])
    table = table.at[OFF_BITS:OFF_BITS + REC_BITS].set(params["rec_w_t"])
    table = table.at[OFF_N:OFF_N + N_VOCAB].set(params["n"])

    # hi/lo bf16 split: act (0/1, exact in bf16) x (hi + lo) in two MXU
    # passes reconstructs the f32 matmul to ~2^-16 relative per weight.
    hi = table.astype(jnp.bfloat16)
    lo = (table - hi.astype(jnp.float32)).astype(jnp.bfloat16)
    table_hl = jnp.stack([hi, lo])                            # (2, 128, dim)

    w_x, w_y = params["wxy"][0], params["wxy"][1]
    scale_in = jnp.float32(np.pi / 100000.0)   # fold pi and 1/1e5 into w rows
    w_x_full = jnp.concatenate([w_x, w_x]) * scale_in
    w_y_full = jnp.concatenate([w_y, w_y]) * scale_in
    offset = jnp.concatenate([jnp.zeros((half,), jnp.float32),
                              jnp.full((half,), -np.pi / 2.0, jnp.float32)])
    aux = jnp.stack([w_x_full, w_y_full, offset,
                     params["pad"][0]]).astype(jnp.float32)   # (4, dim)
    return table_hl, aux


def spiht_embedder_forward(metadata_ids, params, *, token_tile=512,
                           out_dtype=jnp.float32):
    B, S, F = metadata_ids.shape
    assert F == 8
    N = B * S
    dim = params["action"].shape[1]
    assert dim % 2 == 0 and dim % 128 == 0

    table_hl, aux = _pack_kernel_weights(params)
    # pos_scale folded into the cosine polynomial coefficients (SMEM scalars).
    cos_coefs = (jnp.asarray(_COS_EVEN_COEFFS, jnp.float32)
                 * params["pos_scale"].reshape(()))           # (8,) f32

    ids = metadata_ids.reshape(N, F).astype(jnp.int32)

    # Tile selection:
    #  * multiple of 16 keeps bf16 output stores on native (16,128) tiles,
    #  * capped at token_tile (=512) so per-step VMEM fits v5e's 16 MiB
    #    default scoped limit with margin,
    #  * capped at ~cdiv(N,4) so the "parallel" grid has several steps and
    #    both v7x TensorCores get work even at small N.
    def round_up(v, m):
        return ((v + m - 1) // m) * m

    tile = max(16, min(round_up(token_tile, 16), round_up(-(-N // 4), 16)))
    n_pad = round_up(N, tile)
    if n_pad != N:
        ids = jnp.pad(ids, ((0, n_pad - N), (0, 0)))   # zero rows == pad tokens

    out = pl.pallas_call(
        spiht_embed_kernel,
        out_shape=jax.ShapeDtypeStruct((n_pad, dim), out_dtype),
        grid=(n_pad // tile,),
        in_specs=[
            pl.BlockSpec((tile, F), lambda i: (i, 0)),
            # constant-index blocks: same block index every step -> DMA'd once
            pl.BlockSpec((2, K_PAD, dim), lambda i: (0, 0, 0)),
            pl.BlockSpec((4, dim), lambda i: (0, 0)),
            pl.BlockSpec(memory_space=pltpu.MemorySpace.SMEM),   # cos coeffs
        ],
        out_specs=pl.BlockSpec((tile, dim), lambda i: (i, 0)),
        compiler_params=pltpu.CompilerParams(
            dimension_semantics=("parallel",)),
    )(ids, table_hl, aux, cos_coefs)

    if n_pad != N:
        out = out[:N]
    return out.reshape(B, S, dim)


def reference_forward(metadata_ids, params):
    """Pure-JAX mirror of SpihtEmbedder.forward (eval mode)."""
    ids = metadata_ids.astype(jnp.int32)
    pad_mask = jnp.all(ids == 0, axis=-1)
    action = jnp.take(params["action"], ids[..., 0], axis=0)
    channel = jnp.take(params["channel"], ids[..., 3], axis=0)
    filt = jnp.take(params["filt"], ids[..., 4], axis=0)
    depth = jnp.take(params["depth"], ids[..., 5], axis=0)
    n_emb = jnp.take(params["n"], ids[..., 6], axis=0)
    x = ids[..., 1].astype(jnp.float32) / 100000.0
    y = ids[..., 2].astype(jnp.float32) / 100000.0
    w_x, w_y = params["wxy"][0], params["wxy"][1]
    phase = jnp.pi * (w_x * x[..., None] + w_y * y[..., None])
    pos = jnp.concatenate([jnp.cos(phase), jnp.sin(phase)], axis=-1)
    pos = pos * params["pos_scale"][0, 0]
    rec = ids[..., 7] + 2 ** 15
    bits = ((rec[..., None] & (1 << jnp.arange(REC_BITS))) != 0).astype(jnp.float32)
    rec_emb = jnp.dot(bits, params["rec_w_t"],
                      precision=jax.lax.Precision.HIGHEST)
    emb = action + channel + filt + depth + n_emb + pos + rec_emb
    emb = emb * (~pad_mask)[..., None]
    emb = emb + pad_mask[..., None] * params["pad"][0]
    return emb


if __name__ == "__main__":
    B, S = 2, 16
    key = jax.random.PRNGKey(0)
    k = jax.random.split(key, 8)
    action_ids = jax.random.randint(k[0], (B, S), 0, ACTION_SIZE)
    height_ids = jax.random.randint(k[1], (B, S), -100000, 100001)
    width_ids = jax.random.randint(k[2], (B, S), -100000, 100001)
    channel_ids = jax.random.randint(k[3], (B, S), 0, DWT_CHANNELS)
    filter_ids = jax.random.randint(k[4], (B, S), 0, N_FILTERS)
    depth_ids = jax.random.randint(k[5], (B, S), 0, MAX_DWT_DEPTH)
    n_ids = jax.random.randint(k[6], (B, S), 0, N_VOCAB)
    rec_vals = jax.random.randint(k[7], (B, S), -1000, 1001)
    metadata_ids = jnp.stack(
        [action_ids, height_ids, width_ids, channel_ids,
         filter_ids, depth_ids, n_ids, rec_vals], axis=-1).astype(jnp.int32)
    # mark the last two tokens of each sequence as padding (all-zero rows)
    metadata_ids = metadata_ids.at[:, -2:, :].set(0)

    params = make_params(DIM)
    ref = reference_forward(metadata_ids, params)

    # f32 output path (module-default semantics); tolerance covers the
    # intentional bf16 hi/lo weight split (~2^-16 per-weight residual).
    out = spiht_embedder_forward(metadata_ids, params)
    out = jax.block_until_ready(out)
    np.testing.assert_allclose(np.asarray(out), np.asarray(ref),
                               rtol=2e-4, atol=5e-4)

    # bf16 output path (optional HBM-writeback saver); loose tolerance for
    # the bf16 store rounding.
    out_bf16 = spiht_embedder_forward(metadata_ids, params,
                                      out_dtype=jnp.bfloat16)
    out_bf16 = jax.block_until_ready(out_bf16)
    np.testing.assert_allclose(np.asarray(out_bf16, dtype=np.float32),
                               np.asarray(ref), rtol=1e-2, atol=6e-2)

    print("KERNEL_OK")
</pallas_src>

<mosaic_0001>
module attributes {stable_mosaic.version = 11 : i64} {
  func.func @spiht_embed_kernel(%arg0: i32, %arg1: memref<16x8xi32, #tpu.memory_space<vmem>>, %arg2: memref<2x128x512xbf16, #tpu.memory_space<vmem>>, %arg3: memref<4x512xf32, #tpu.memory_space<vmem>>, %arg4: memref<8xf32, #tpu.memory_space<smem>>, %arg5: memref<16x512xf32, #tpu.memory_space<vmem>>) attributes {dimension_semantics = [#tpu.dimension_semantics<parallel>], iteration_bounds = array<i64: 2>, scalar_prefetch = 0 : i64, scratch_operands = 0 : i64, tpu.core_type = #tpu.core_type<tc>, window_params = [{transform_indices = @transform_0, window_bounds = array<i64: 16, 8>}, {pipeline_mode = #tpu.pipeline_mode<synchronous>, transform_indices = @transform_1, window_bounds = array<i64: 2, 128, 512>}, {pipeline_mode = #tpu.pipeline_mode<synchronous>, transform_indices = @transform_2, window_bounds = array<i64: 4, 512>}, {transform_indices = @transform_3, window_bounds = array<i64: 8>}, {transform_indices = @transform_4, window_bounds = array<i64: 16, 512>}]} {
    %c0 = arith.constant 0 : index
    %c0_0 = arith.constant 0 : index
    %0 = vector.load %arg1[%c0, %c0_0] : memref<16x8xi32, #tpu.memory_space<vmem>>, vector<16x8xi32>
    %c0_i32 = arith.constant 0 : i32
    %1 = vector.broadcast %c0_i32 : i32 to vector<16x8xi32>
    %2 = arith.cmpi eq, %0, %1 : vector<16x8xi32>
    %cst = arith.constant 1.000000e+00 : f32
    %cst_1 = arith.constant 0.000000e+00 : f32
    %3 = vector.broadcast %cst : f32 to vector<16x8xf32>
    %4 = vector.broadcast %cst_1 : f32 to vector<16x8xf32>
    %5 = arith.select %2, %3, %4 : vector<16x8xi1>, vector<16x8xf32>
    %cst_2 = arith.constant dense<0x7F800000> : vector<16xf32>
    %6 = vector.multi_reduction <minimumf>, %5, %cst_2 [1] : vector<16x8xf32> to vector<16xf32>
    %cst_3 = arith.constant 0.000000e+00 : f32
    %7 = vector.broadcast %cst_3 : f32 to vector<16xf32>
    %8 = arith.cmpf ogt, %6, %7 : vector<16xf32>
    %9 = vector.shape_cast %8 : vector<16xi1> to vector<16x1xi1>
    %10 = tpu.iota {dimensions = array<i32: 1>} : vector<1x128xi32>
    %c43_i32 = arith.constant 43 : i32
    %11 = vector.broadcast %c43_i32 : i32 to vector<1x128xi32>
    %12 = arith.subi %10, %11 : vector<1x128xi32>
    %c0_i32_4 = arith.constant 0 : i32
    %13 = vector.broadcast %c0_i32_4 : i32 to vector<1x128xi32>
    %14 = arith.cmpi sge, %12, %13 : vector<1x128xi32>
    %c16_i32 = arith.constant 16 : i32
    %15 = vector.broadcast %c16_i32 : i32 to vector<1x128xi32>
    %16 = arith.cmpi slt, %12, %15 : vector<1x128xi32>
    %17 = arith.andi %14, %16 : vector<1x128xi1>
    %c0_i32_5 = arith.constant 0 : i32
    %18 = vector.broadcast %c0_i32_5 : i32 to vector<1x128xi32>
    %19 = arith.select %17, %12, %18 : vector<1x128xi1>, vector<1x128xi32>
    %c1_i32 = arith.constant 1 : i32
    %20 = vector.broadcast %c1_i32 : i32 to vector<1x128xi32>
    %21 = arith.shli %20, %19 : vector<1x128xi32>
    %c0_i32_6 = arith.constant 0 : i32
    %22 = vector.broadcast %c0_i32_6 : i32 to vector<1x128xi32>
    %23 = arith.select %17, %21, %22 : vector<1x128xi1>, vector<1x128xi32>
    %24 = vector.extract_strided_slice %0 {offsets = [0, 0], sizes = [16, 1], strides = [1, 1]} : vector<16x8xi32> to vector<16x1xi32>
    %c0_i32_7 = arith.constant 0 : i32
    %25 = vector.broadcast %c0_i32_7 : i32 to vector<16x1xi32>
    %26 = arith.addi %24, %25 : vector<16x1xi32>
    %27 = vector.broadcast %10 : vector<1x128xi32> to vector<16x128xi32>
    %28 = vector.broadcast %26 : vector<16x1xi32> to vector<16x128xi32>
    %29 = arith.cmpi eq, %27, %28 : vector<16x128xi32>
    %30 = vector.extract_strided_slice %0 {offsets = [0, 3], sizes = [16, 1], strides = [1, 1]} : vector<16x8xi32> to vector<16x1xi32>
    %c8_i32 = arith.constant 8 : i32
    %31 = vector.broadcast %c8_i32 : i32 to vector<16x1xi32>
    %32 = arith.addi %30, %31 : vector<16x1xi32>
    %33 = vector.broadcast %10 : vector<1x128xi32> to vector<16x128xi32>
    %34 = vector.broadcast %32 : vector<16x1xi32> to vector<16x128xi32>
    %35 = arith.cmpi eq, %33, %34 : vector<16x128xi32>
    %36 = arith.ori %29, %35 : vector<16x128xi1>
    %37 = vector.extract_strided_slice %0 {offsets = [0, 4], sizes = [16, 1], strides = [1, 1]} : vector<16x8xi32> to vector<16x1xi32>
    %c11_i32 = arith.constant 11 : i32
    %38 = vector.broadcast %c11_i32 : i32 to vector<16x1xi32>
    %39 = arith.addi %37, %38 : vector<16x1xi32>
    %40 = vector.broadcast %10 : vector<1x128xi32> to vector<16x128xi32>
    %41 = vector.broadcast %39 : vector<16x1xi32> to vector<16x128xi32>
    %42 = arith.cmpi eq, %40, %41 : vector<16x128xi32>
    %43 = arith.ori %36, %42 : vector<16x128xi1>
    %44 = vector.extract_strided_slice %0 {offsets = [0, 5], sizes = [16, 1], strides = [1, 1]} : vector<16x8xi32> to vector<16x1xi32>
    %c15_i32 = arith.constant 15 : i32
    %45 = vector.broadcast %c15_i32 : i32 to vector<16x1xi32>
    %46 = arith.addi %44, %45 : vector<16x1xi32>
    %47 = vector.broadcast %10 : vector<1x128xi32> to vector<16x128xi32>
    %48 = vector.broadcast %46 : vector<16x1xi32> to vector<16x128xi32>
    %49 = arith.cmpi eq, %47, %48 : vector<16x128xi32>
    %50 = arith.ori %43, %49 : vector<16x128xi1>
    %51 = vector.extract_strided_slice %0 {offsets = [0, 6], sizes = [16, 1], strides = [1, 1]} : vector<16x8xi32> to vector<16x1xi32>
    %c27_i32 = arith.constant 27 : i32
    %52 = vector.broadcast %c27_i32 : i32 to vector<16x1xi32>
    %53 = arith.addi %51, %52 : vector<16x1xi32>
    %54 = vector.broadcast %10 : vector<1x128xi32> to vector<16x128xi32>
    %55 = vector.broadcast %53 : vector<16x1xi32> to vector<16x128xi32>
    %56 = arith.cmpi eq, %54, %55 : vector<16x128xi32>
    %57 = arith.ori %50, %56 : vector<16x128xi1>
    %58 = vector.extract_strided_slice %0 {offsets = [0, 7], sizes = [16, 1], strides = [1, 1]} : vector<16x8xi32> to vector<16x1xi32>
    %c32768_i32 = arith.constant 32768 : i32
    %59 = vector.broadcast %c32768_i32 : i32 to vector<16x1xi32>
    %60 = arith.addi %58, %59 : vector<16x1xi32>
    %61 = vector.broadcast %60 : vector<16x1xi32> to vector<16x128xi32>
    %62 = vector.broadcast %23 : vector<1x128xi32> to vector<16x128xi32>
    %63 = arith.andi %61, %62 : vector<16x128xi32>
    %c0_i32_8 = arith.constant 0 : i32
    %64 = vector.broadcast %c0_i32_8 : i32 to vector<16x128xi32>
    %65 = arith.cmpi ne, %63, %64 : vector<16x128xi32>
    %66 = arith.ori %57, %65 : vector<16x128xi1>
    %67 = arith.extui %66 : vector<16x128xi1> to vector<16x128xi32>
    %68 = arith.sitofp %67 : vector<16x128xi32> to vector<16x128xf32>
    %69 = arith.truncf %68 : vector<16x128xf32> to vector<16x128xbf16>
    %c0_9 = arith.constant 0 : index
    %c0_10 = arith.constant 0 : index
    %c0_11 = arith.constant 0 : index
    %70 = vector.load %arg2[%c0_9, %c0_10, %c0_11] : memref<2x128x512xbf16, #tpu.memory_space<vmem>>, vector<1x128x512xbf16>
    %71 = vector.shape_cast %70 : vector<1x128x512xbf16> to vector<128x512xbf16>
    %cst_12 = arith.constant dense<0.000000e+00> : vector<16x512xf32>
    %72 = tpu.matmul %69, %71, %cst_12 {dimension_numbers = #tpu.dot_dimension_numbers<[1], [0], [0], [1], [0, 0, 1, 1], [], []>} : vector<16x128xbf16>, vector<128x512xbf16>, vector<16x512xf32> -> vector<16x512xf32>
    %c1 = arith.constant 1 : index
    %c0_13 = arith.constant 0 : index
    %c0_14 = arith.constant 0 : index
    %73 = vector.load %arg2[%c1, %c0_13, %c0_14] : memref<2x128x512xbf16, #tpu.memory_space<vmem>>, vector<1x128x512xbf16>
    %74 = vector.shape_cast %73 : vector<1x128x512xbf16> to vector<128x512xbf16>
    %cst_15 = arith.constant dense<0.000000e+00> : vector<16x512xf32>
    %75 = tpu.matmul %69, %74, %cst_15 {dimension_numbers = #tpu.dot_dimension_numbers<[1], [0], [0], [1], [0, 0, 1, 1], [], []>} : vector<16x128xbf16>, vector<128x512xbf16>, vector<16x512xf32> -> vector<16x512xf32>
    %76 = arith.addf %72, %75 : vector<16x512xf32>
    %77 = vector.extract_strided_slice %0 {offsets = [0, 1], sizes = [16, 1], strides = [1, 1]} : vector<16x8xi32> to vector<16x1xi32>
    %78 = arith.sitofp %77 : vector<16x1xi32> to vector<16x1xf32>
    %79 = vector.extract_strided_slice %0 {offsets = [0, 2], sizes = [16, 1], strides = [1, 1]} : vector<16x8xi32> to vector<16x1xi32>
    %80 = arith.sitofp %79 : vector<16x1xi32> to vector<16x1xf32>
    %c0_16 = arith.constant 0 : index
    %c0_17 = arith.constant 0 : index
    %81 = vector.load %arg3[%c0_16, %c0_17] : memref<4x512xf32, #tpu.memory_space<vmem>>, vector<1x512xf32>
    %82 = vector.broadcast %78 : vector<16x1xf32> to vector<16x512xf32>
    %83 = vector.broadcast %81 : vector<1x512xf32> to vector<16x512xf32>
    %84 = arith.mulf %82, %83 : vector<16x512xf32>
    %c1_18 = arith.constant 1 : index
    %c0_19 = arith.constant 0 : index
    %85 = vector.load %arg3[%c1_18, %c0_19] : memref<4x512xf32, #tpu.memory_space<vmem>>, vector<1x512xf32>
    %86 = vector.broadcast %80 : vector<16x1xf32> to vector<16x512xf32>
    %87 = vector.broadcast %85 : vector<1x512xf32> to vector<16x512xf32>
    %88 = arith.mulf %86, %87 : vector<16x512xf32>
    %89 = arith.addf %84, %88 : vector<16x512xf32>
    %c2 = arith.constant 2 : index
    %c0_20 = arith.constant 0 : index
    %90 = vector.load %arg3[%c2, %c0_20] : memref<4x512xf32, #tpu.memory_space<vmem>>, vector<1x512xf32>
    %91 = vector.broadcast %90 : vector<1x512xf32> to vector<16x512xf32>
    %92 = arith.addf %89, %91 : vector<16x512xf32>
    %cst_21 = arith.constant 0.159154937 : f32
    %93 = vector.broadcast %cst_21 : f32 to vector<16x512xf32>
    %94 = arith.mulf %92, %93 : vector<16x512xf32>
    %cst_22 = arith.constant 5.000000e-01 : f32
    %95 = vector.broadcast %cst_22 : f32 to vector<16x512xf32>
    %96 = arith.addf %94, %95 : vector<16x512xf32>
    %97 = math.floor %96 : vector<16x512xf32>
    %cst_23 = arith.constant 6.28318548 : f32
    %98 = vector.broadcast %cst_23 : f32 to vector<16x512xf32>
    %99 = arith.mulf %97, %98 : vector<16x512xf32>
    %100 = arith.subf %92, %99 : vector<16x512xf32>
    %101 = arith.mulf %100, %100 : vector<16x512xf32>
    %c7 = arith.constant 7 : index
    %102 = memref.load %arg4[%c7] : memref<8xf32, #tpu.memory_space<smem>>
    %103 = vector.broadcast %102 : f32 to vector<16x512xf32>
    %104 = arith.mulf %103, %101 : vector<16x512xf32>
    %c6 = arith.constant 6 : index
    %105 = memref.load %arg4[%c6] : memref<8xf32, #tpu.memory_space<smem>>
    %106 = vector.broadcast %105 : f32 to vector<16x512xf32>
    %107 = arith.addf %104, %106 : vector<16x512xf32>
    %108 = arith.mulf %107, %101 : vector<16x512xf32>
    %c5 = arith.constant 5 : index
    %109 = memref.load %arg4[%c5] : memref<8xf32, #tpu.memory_space<smem>>
    %110 = vector.broadcast %109 : f32 to vector<16x512xf32>
    %111 = arith.addf %108, %110 : vector<16x512xf32>
    %112 = arith.mulf %111, %101 : vector<16x512xf32>
    %c4 = arith.constant 4 : index
    %113 = memref.load %arg4[%c4] : memref<8xf32, #tpu.memory_space<smem>>
    %114 = vector.broadcast %113 : f32 to vector<16x512xf32>
    %115 = arith.addf %112, %114 : vector<16x512xf32>
    %116 = arith.mulf %115, %101 : vector<16x512xf32>
    %c3 = arith.constant 3 : index
    %117 = memref.load %arg4[%c3] : memref<8xf32, #tpu.memory_space<smem>>
    %118 = vector.broadcast %117 : f32 to vector<16x512xf32>
    %119 = arith.addf %116, %118 : vector<16x512xf32>
    %120 = arith.mulf %119, %101 : vector<16x512xf32>
    %c2_24 = arith.constant 2 : index
    %121 = memref.load %arg4[%c2_24] : memref<8xf32, #tpu.memory_space<smem>>
    %122 = vector.broadcast %121 : f32 to vector<16x512xf32>
    %123 = arith.addf %120, %122 : vector<16x512xf32>
    %124 = arith.mulf %123, %101 : vector<16x512xf32>
    %c1_25 = arith.constant 1 : index
    %125 = memref.load %arg4[%c1_25] : memref<8xf32, #tpu.memory_space<smem>>
    %126 = vector.broadcast %125 : f32 to vector<16x512xf32>
    %127 = arith.addf %124, %126 : vector<16x512xf32>
    %128 = arith.mulf %127, %101 : vector<16x512xf32>
    %c0_26 = arith.constant 0 : index
    %129 = memref.load %arg4[%c0_26] : memref<8xf32, #tpu.memory_space<smem>>
    %130 = vector.broadcast %129 : f32 to vector<16x512xf32>
    %131 = arith.addf %128, %130 : vector<16x512xf32>
    %132 = arith.addf %76, %131 : vector<16x512xf32>
    %c3_27 = arith.constant 3 : index
    %c0_28 = arith.constant 0 : index
    %133 = vector.load %arg3[%c3_27, %c0_28] : memref<4x512xf32, #tpu.memory_space<vmem>>, vector<1x512xf32>
    %134 = vector.shape_cast %9 : vector<16x1xi1> to vector<16x1xi1>
    %135 = vector.broadcast %134 : vector<16x1xi1> to vector<16x512xi1>
    %136 = vector.shape_cast %133 : vector<1x512xf32> to vector<1x512xf32>
    %137 = vector.broadcast %136 : vector<1x512xf32> to vector<16x512xf32>
    %138 = arith.select %135, %137, %132 : vector<16x512xi1>, vector<16x512xf32>
    %c0_29 = arith.constant 0 : index
    %c0_30 = arith.constant 0 : index
    %139 = vector.load %arg5[%c0_29, %c0_30] : memref<16x512xf32, #tpu.memory_space<vmem>>, vector<16x512xf32>
    tpu.vector_store %arg5[%c0_29, %c0_30], %138 {strides = array<i32>} : memref<16x512xf32, #tpu.memory_space<vmem>>, vector<16x512xf32>,
    return
  }
  func.func @transform_0(%arg0: i32) -> (i32, i32) {
    %c0_i32 = arith.constant 0 : i32
    %c0_i32_0 = arith.constant 0 : i32
    return %arg0, %c0_i32 : i32, i32
  }
  func.func @transform_1(%arg0: i32) -> (i32, i32, i32) {
    %c0_i32 = arith.constant 0 : i32
    %c0_i32_0 = arith.constant 0 : i32
    %c0_i32_1 = arith.constant 0 : i32
    %c0_i32_2 = arith.constant 0 : i32
    return %c0_i32, %c0_i32_0, %c0_i32_1 : i32, i32, i32
  }
  func.func @transform_2(%arg0: i32) -> (i32, i32) {
    %c0_i32 = arith.constant 0 : i32
    %c0_i32_0 = arith.constant 0 : i32
    %c0_i32_1 = arith.constant 0 : i32
    return %c0_i32, %c0_i32_0 : i32, i32
  }
  func.func @transform_3(%arg0: i32) -> i32 {
    %c0_i32 = arith.constant 0 : i32
    %c0_i32_0 = arith.constant 0 : i32
    return %c0_i32 : i32
  }
  func.func @transform_4(%arg0: i32) -> (i32, i32) {
    %c0_i32 = arith.constant 0 : i32
    %c0_i32_0 = arith.constant 0 : i32
    return %arg0, %c0_i32 : i32, i32
  }
}

</mosaic_0001>

<bundles_post_ra>
// kernel: tpu_custom_call.1
= control target key start
LH: loop header
LB: loop body
LE: loop exit
PB: predicated region body
PF: predicated region fallthrough
CT: control target
= control target key end

     0   :  { %9 = vsyncpa [#allocation3], 0  ;;  %s2101_s0 = inlined_call_operand.vmem [shape: s32[32,8], index: 0, kind: input, shape index: {}]   ;;  %s2102_s1 = inlined_call_operand.hbm [shape: bf16[2,128,512], index: 1, kind: input, shape index: {}]   ;;  %s2103_s2 = inlined_call_operand.vmem [shape: f32[4,512], index: 2, kind: input, shape index: {}]   ;;  %s2104_s3 = inlined_call_operand.vmem [shape: f32[8], index: 3, kind: input, shape index: {}]   ;;  %s2105_s4 = inlined_call_operand.hbm [shape: f32[32,512], index: 4, kind: output, shape index: {}]  }
   0x1   :  { %10 = vsyncpa [#allocation5], 0 }
   0x2   :  { %11 = vsyncpa [#allocation4], 0 }
   0x3   :  { %13 = vsyncpa [#allocation4 + $0x1], 0  ;;  %s1775_s15 = smov 0   ;;  %s1777_s16 = smov 0  }
   0x4   :  { %s1779_s17 = smov 0   ;;  %s1781_s18 = smov 0  }
   0x5 LB: > { %s1796_s19 = sadd.s32 4294967295, %s1732_s18   ;;  %s1333_s20 = sadd.s32 4294967294, %s1732_s18   ;;  %s1732_s18 = sphi %s1781_s18, %s2123_s18   ;;  %s1728_s17 = sphi %s1779_s17, %s2122_s17   ;;  %s1724_s16 = sphi %s1777_s16, %s2121_s16   ;;  %s1720_s15 = sphi %s1775_s15, %s2120_s15  }
   0x6   : > { %s1800_s21 = sadd.s32 1, %s1732_s18   ;;  %s115_s22 = sadd.s32 1, %s1728_s17 }
   0x7   : > { %s112_s23 = ssub.s32 %s1732_s18, %s1800_s21  ;;  %p125_p0 = scmp.ne.s32.totalorder %s1728_s17, %s1724_s16 }
   0x8   : > { %p113_p1 = scmp.eq.s32.totalorder %s112_s23, 0  ;;  %p126_p2 = scmp.eq.s32.totalorder %s1796_s19, 1 }
   0x9   : > { %p131_p3 = scmp.ne.s32.totalorder %s1724_s16, %s1720_s15  ;;  %p132_p4 = scmp.eq.s32.totalorder %s1333_s20, 1 }
   0xa   : > { %s1811_s24 = scalar_select %p113_p1, %s1728_s17, %s115_s22  }
   0xb   : > { %p1813_p5 = por %p126_p2, %p125_p0  ;;  %p1817_p6 = por %p132_p4, %p131_p3 }
   0xc   : > { %p1334_p7 = scmp.ge.s32.totalorder %s1732_s18, 1  ;;  %p139_p8 = scmp.lt.s32.totalorder %s1732_s18, 3 }
   0xd   : > { %s2109_s25 = scalar_select %p1813_p5, 1, 0 }
   0xe   : > { %s2110_s26 = scalar_select %p1817_p6, 1, 0 }
   0xf   : > { %p2106_p9 = scmp.eq.s32.totalorder %s1796_s19, 0  ;;  %p1824_p10 = pnand %p1334_p7, %p139_p8 }
  0x10   : > { %s1734_s28 = smov [#allocation2]   ;;  %s168_s6 = sshll.u32 %s2104_s3, 4  ;;  %s1839_s6 = int_to_ptr.vmem [resolvable:$true] %s168_s6 }
  0x11   : > { %s2111_s27 = scalar_select %p1824_p10, 1, 0 }
  0x12   : > { %s151_s29 = sshll.u32 %s1734_s28, 4  ;;  %p1447_p11 = pneg %p1824_p10  ;;  %s152_s29 = int_to_ptr.vmem [resolvable:$true] %s151_s29 }
  0x13   : > { %s1619_s10 = scalar_lea.hbm %s2102_s1, 8192 }
  0x14   : > { %p1835_p12 = pnand %p2106_p9, %p1447_p11  ;;  %p1620_p13 = scmp.ne.s32.totalorder %s2102_s1, %s1619_s10 }
  0x15   : > { %p1626_p3 = scmp.lt.u32.totalorder %s1619_s10, %s2102_s1 }
  0x16   : > { %p1621_p0 = pneg %p1835_p12 }
  0x18   : > { %p1622_p1 = pnand %p1621_p0, %p1620_p13 }
  0x1a   : > { %p1623_p2 = pneg %p1622_p1 }
  0x1c   : > { %p1628_p4 = pnand %p1626_p3, %p1623_p2 }
  0x1e   : > { %1631 = shalt.err (!%p1628_p4)
}
  0x1f   : > { %s1632_s20 = scalar_lea.vmem %s152_s29, 8192  ;;  %p1640_p9 = scmp.lt.s32.totalorder %s152_s29, %s152_s29 }
  0x20   : > { %p1633_p7 = scmp.ne.s32.totalorder %s152_s29, %s1632_s20  ;;  %p1641_p6 = scmp.lt.s32.totalorder %s1632_s20, %s1632_s20 }
  0x22   : > { %p1635_p8 = pnand %p1633_p7, %p1621_p0  ;;  %p1642_p5 = por %p1641_p6, %p1640_p9 }
  0x24   : > { %p1636_p11 = pneg %p1635_p8 }
  0x26   : > { %p1643_p10 = pnand %p1642_p5, %p1636_p11 }
  0x28   : > { %1646 = shalt.err (!%p1643_p10)
}
  0x29   : > { %s1735_s22 = smov 256   ;;  %s1736_s23 = smov 16  }
  0x2a   : > { %1450 = dma.hbm_to_vmem [thread:$0]  (!%p1835_p12), %s2102_s1, 8192, %s152_s29, [#allocation3], %s1735_s22, %s1735_s22, %s1736_s23  }
  0x2b   : > { %s1647_s5 = scalar_lea.vmem %s1839_s6, 16  ;;  %p1655_p5 = scmp.lt.s32.totalorder %s1839_s6, %s1839_s6 }
  0x2c   : > { %p1648_p13 = scmp.ne.s32.totalorder %s1839_s6, %s1647_s5  ;;  %p1656_p9 = scmp.lt.s32.totalorder %s1647_s5, %s1647_s5 }
  0x2e   : > { %p1650_p1 = pnand %p1648_p13, %p1621_p0  ;;  %p1657_p10 = por %p1656_p9, %p1655_p5 }
  0x30   : > { %p1651_p6 = pneg %p1650_p1 }
  0x32   : > { %p1658_p2 = pnand %p1657_p10, %p1651_p6 }
  0x34   : > { %1661 = shalt.err (!%p1658_p2)
}
  0x35   : > { %s1737_s8 = smov [#allocation6]   ;;  %p2113_p3 = scmp.ne.s32.totalorder %s2111_s27, 0 }
  0x36   : > { %1453 = dma.vmem_to_smem (!%p1835_p12), %s1839_s6, 16, %s1737_s8, [#allocation5]  }
  0x37   : > { %190 = sbr.rel (%p2113_p3) target bundleno = 506 (0x1fa), region = 36  ;;  %p2114_p4 = scmp.eq.s32.totalorder (!%p2113_p3), %s1796_s19, 0 }
  0x3e   : > { %1707 = dma.done.wait (%p2114_p4), [#allocation3], 8192   ;;  %p2115_p0 = pmov %p2114_p4 }
  0x40   : > { %1709 = vsyncadd (%p2115_p0), [#allocation3], 4294959104  ;;  %p2116_p7 = pmov %p2115_p0 }
  0x41   : > { %p2117_p8 = pmov %p2115_p0 }
  0x42   : > { %1711 = dma.done.wait (%p2116_p7), [#allocation5], 16  }
  0x43   : > { %1713 = vsyncadd (%p2117_p8), [#allocation5], 4294967280 }
  0x44   : > { %200 = sfence }
  0x45   : > { %s1342_s29 = sshll.u32 %s1796_s19, 1  ;;  %v1738_v0 = vmov 0   ;;  %v1739_v1 = vmov 3   ;;  %v1523_v5 = vld [vmem:[#allocation2 + $0x104] ss:$16 sps:$4 sm:$0xff]   ;;  %v1740_v16 = vmov 4   ;;  %v244_v61 = vlaneseq }
  0x46   : > { %1510 = vset.pattern.permute.xlu0 %v1738_v0  ;;  %p222_p12 = scmp.lt.s32.totalorder %s1342_s29, 3  ;;  %1511 = vset.pattern.permute.xlu1 %v1739_v1  ;;  %v1525_v7 = vld [vmem:[#allocation2 + $0x10c] ss:$16 sps:$4 sm:$0xff]   ;;  %v1527_v8 = vld [vmem:[#allocation2 + $0x100] ss:$16 sps:$4 sm:$0xff]   ;;  %v1741_v23 = vmov 5  }
  0x47   : > { %585 = vmatprep.mubr.bf16.mxu0 %v1738_v0  ;;  %628 = vmatprep.mubr.bf16.mxu1 %v1738_v0  ;;  %v1528_v9 = vld [vmem:[#allocation2 + $0x108] ss:$16 sps:$4 sm:$0xff]   ;;  %v1529_v11 = vld [vmem:[#allocation2 + $0x124] ss:$16 sps:$4 sm:$0xff]   ;;  %v1531_v12 = vld [vmem:[#allocation2 + $0x12c] ss:$16 sps:$4 sm:$0xff]  }
  0x48   : > { %s2125_s29 = smov (!%p222_p12, %s1342_s29), 3  ;;  %553 = vmatprep.subr.bf16.mxu0 %v1523_v5  ;;  %596 = vmatprep.subr.bf16.mxu1 %v1525_v7  ;;  %v1533_v13 = vld [vmem:[#allocation2 + $0x120] ss:$16 sps:$4 sm:$0xff]   ;;  %v1534_v14 = vld [vmem:[#allocation2 + $0x128] ss:$16 sps:$4 sm:$0xff]   ;;  %v1742_v32 = vmov 6  }
  0x49   : > { %s1343_s27 = sshll.u32 %s2125_s29, 3  ;;  %554 = vmatpush1.bf16.msra.mxu0 %v1527_v8  ;;  %597 = vmatpush1.bf16.msra.mxu1 %v1528_v9  ;;  %v1535_v17 = vld [vmem:[#allocation2 + $0x144] ss:$16 sps:$4 sm:$0xff]   ;;  %v1537_v18 = vld [vmem:[#allocation2 + $0x14c] ss:$16 sps:$4 sm:$0xff]   ;;  %v1743_v35 = vmov 7  }
  0x4a   : > { %s225_s9 = scalar_lea.vmem %s2101_s0, %s1343_s27  ;;  %555 = vmatprep.subr.bf16.mxu0 %v1529_v11  ;;  %598 = vmatprep.subr.bf16.mxu1 %v1531_v12  ;;  %v1539_v20 = vld [vmem:[#allocation2 + $0x140] ss:$16 sps:$4 sm:$0xff]   ;;  %v1540_v21 = vld [vmem:[#allocation2 + $0x148] ss:$16 sps:$4 sm:$0xff]   ;;  %v1541_v24 = vld [vmem:[#allocation2 + $0x164] ss:$16 sps:$4 sm:$0xff]  }
  0x4b   : > { %v1890_v2 = vld [vmem:[%s225_s9] sm:$0xff]  ;;  %v1892_v3 = vld [vmem:[%s225_s9 + $0x8] sm:$0xff]  ;;  %v1744_v41 = vmov 1   ;;  %v1745_v54 = vmov 2   ;;  %v1746_v56 = vmov 0.0   ;;  %vm235_vm1 = vcmask 64512  }
  0x4c   : > { %254 = vperm.xlu0 %1510, %v1890_v2   ;;  %v261_v4 = vadd.s32 8, %v1890_v2  ;;  %v262_v6 = vadd.s32 8, %v1892_v3  ;;  %v273_v10 = vadd.s32 11, %v1890_v2  ;;  %v274_v15 = vadd.s32 11, %v1892_v3  ;;  %v1543_v25 = vld [vmem:[#allocation2 + $0x16c] ss:$16 sps:$4 sm:$0xff]  }
  0x4d   : > { %556 = vmatpush1.bf16.msra.mxu0 %v1533_v13  ;;  %v286_v19 = vadd.s32 15, %v1892_v3  ;;  %599 = vmatpush1.bf16.msra.mxu1 %v1534_v14  ;;  %v285_v22 = vadd.s32 15, %v1890_v2  ;;  %v1545_v26 = vld [vmem:[#allocation2 + $0x160] ss:$16 sps:$4 sm:$0xff]   ;;  %v1546_v27 = vld [vmem:[#allocation2 + $0x168] ss:$16 sps:$4 sm:$0xff]   ;;  %v885_v53 = vcvt.s32.f32 %v1890_v2  ;;  %v886_v55 = vcvt.s32.f32 %v1892_v3 }
  0x4e   : > { %264 = vperm.xlu1 %1511, %v261_v4   ;;  %557 = vmatprep.subr.bf16.mxu0 %v1535_v17  ;;  %v297_v28 = vadd.s32 27, %v1890_v2  ;;  %v309_v29 = vadd.s32 32768, %v1890_v2  ;;  %v1547_v30 = vld [vmem:[#allocation2 + $0x184] ss:$16 sps:$4 sm:$0xff]   ;;  %v1549_v31 = vld [vmem:[#allocation2 + $0x18c] ss:$16 sps:$4 sm:$0xff]  }
  0x4f   : > { %600 = vmatprep.subr.bf16.mxu1 %v1537_v18  ;;  %v1551_v33 = vld [vmem:[#allocation2 + $0x180] ss:$16 sps:$4 sm:$0xff]   ;;  %v1552_v34 = vld [vmem:[#allocation2 + $0x188] ss:$16 sps:$4 sm:$0xff]   ;;  %v310_v36 = vadd.s32 32768, %v1892_v3  ;;  %v298_v44 = vadd.s32 27, %v1892_v3 }
  0x50   : > { %257 = vperm.xlu0 %1510, %v1892_v3   ;;  %v1553_v37 = vld [vmem:[#allocation2 + $0x1a4] ss:$16 sps:$4 sm:$0xff]   ;;  %v1555_v38 = vld [vmem:[#allocation2 + $0x1ac] ss:$16 sps:$4 sm:$0xff]   ;;  %v1557_v39 = vld [vmem:[#allocation2 + $0x1a0] ss:$16 sps:$4 sm:$0xff]  }
  0x51   : > { %558 = vmatpush1.bf16.msra.mxu0 %v1539_v20  ;;  %601 = vmatpush1.bf16.msra.mxu1 %v1540_v21  ;;  %v1558_v40 = vld [vmem:[#allocation2 + $0x1a8] ss:$16 sps:$4 sm:$0xff]   ;;  %v1559_v42 = vld [vmem:[#allocation2 + $0x1c4] ss:$16 sps:$4 sm:$0xff]   ;;  %v1561_v43 = vld [vmem:[#allocation2 + $0x1cc] ss:$16 sps:$4 sm:$0xff]  }
  0x52   : > { %267 = vperm.xlu1 %1511, %v262_v6   ;;  %559 = vmatprep.subr.bf16.mxu0 %v1541_v24  ;;  %v1563_v45 = vld [vmem:[#allocation2 + $0x1c0] ss:$16 sps:$4 sm:$0xff]   ;;  %v1564_v46 = vld [vmem:[#allocation2 + $0x1c8] ss:$16 sps:$4 sm:$0xff]   ;;  %v1565_v47 = vld [vmem:[#allocation2 + $0x1e4] ss:$16 sps:$4 sm:$0xff]  }
  0x53   : > { %602 = vmatprep.subr.bf16.mxu1 %v1543_v25  ;;  %v1567_v48 = vld [vmem:[#allocation2 + $0x1ec] ss:$16 sps:$4 sm:$0xff]   ;;  %v1569_v49 = vld [vmem:[#allocation2 + $0x1e0] ss:$16 sps:$4 sm:$0xff]   ;;  %v1570_v50 = vld [vmem:[#allocation2 + $0x1e8] ss:$16 sps:$4 sm:$0xff]  }
  0x54   : > { %1512 = vset.pattern.permute.xlu0 %v1740_v16  ;;  %v1573_v51 = vld [vmem:[#allocation2 + $0x4] ss:$16 sps:$4 sm:$0xff]   ;;  %v1576_v52 = vld [vmem:[#allocation2 + $0xc] ss:$16 sps:$4 sm:$0xff]   ;;  %vm231_vm0 = vcmp.eq.s32.totalorder %v1890_v2, 0  ;;  %vm232_vm2 = vcmp.eq.s32.totalorder %v1892_v3, 0 }
  0x55   : > { %276 = vperm.xlu0 %1512, %v273_v10   ;;  %560 = vmatpush1.bf16.msra.mxu0 %v1545_v26  ;;  %v233_v57 = vsel %vm231_vm0, 1.0, %v1746_v56  ;;  %v234_v59 = vsel %vm232_vm2, 1.0, %v1746_v56  ;;  %v245_v63 = vand.u32 127, %v244_v61  ;;  %v1571_v20 = vld [vmem:[#allocation2] ss:$16 sps:$4 sm:$0xff]   ;;  %s1413_s22 = sld [smem:[#allocation6 + $0x7]] }
  0x56   : > { %1513 = vset.pattern.permute.xlu1 %v1740_v16  ;;  %603 = vmatpush1.bf16.msra.mxu1 %v1546_v27  ;;  %v236_v58 = vsel %vm235_vm1, %v233_v57, inf  ;;  %v239_v60 = vsel %vm235_vm1, %v234_v59, inf  ;;  %v1574_v21 = vld [vmem:[#allocation2 + $0x8] ss:$16 sps:$4 sm:$0xff]   ;;  %v1582_v24 = vld [vmem:[#allocation2 + $0x2c] ss:$16 sps:$4 sm:$0xff]  }
  0x57   : > { %279 = vperm.xlu1 %1513, %v274_v15   ;;  %561 = vmatprep.subr.bf16.mxu0 %v1547_v30  ;;  %v1344_v4 = vadd.s32 4294967253, %v245_v63  ;;  %v1577_v25 = vld [vmem:[#allocation2 + $0x20] ss:$16 sps:$4 sm:$0xff]   ;;  %v1580_v26 = vld [vmem:[#allocation2 + $0x28] ss:$16 sps:$4 sm:$0xff]   ;;  %s1414_s23 = sld [smem:[#allocation6 + $0x6]] }
  0x58   : > { %604 = vmatprep.subr.bf16.mxu1 %v1549_v31  ;;  %v1585_v27 = vld [vmem:[#allocation2 + $0x44] ss:$16 sps:$4 sm:$0xff]   ;;  %v1586_v30 = vld [vmem:[#allocation2 + $0x48] ss:$16 sps:$4 sm:$0xff]   ;;  %s1415_s28 = sld [smem:[#allocation6 + $0x5]]  ;;  %s1416_s30 = sld [smem:[#allocation6 + $0x4]] }
  0x59   : > { %1515 = vset.pattern.permute.xlu0 %v1741_v23  ;;  %562 = vmatpush1.bf16.msra.mxu0 %v1551_v33  ;;  %vm247_vm3 = vcmp.ge.s32.totalorder %v1344_v4, 0  ;;  %vm248_vm4 = vcmp.lt.s32.totalorder %v1344_v4, 16  ;;  %v1591_v31 = vld [vmem:[#allocation2 + $0x64] ss:$16 sps:$4 sm:$0xff]   ;;  %v1589_v33 = vld [vmem:[#allocation2 + $0x60] ss:$16 sps:$4 sm:$0xff]  }
  0x5a   : > { %291 = vperm.xlu0 %1515, %v286_v19   ;;  %605 = vmatpush1.bf16.msra.mxu1 %v1552_v34  ;;  %vm249_vm5 = vmand %vm247_vm3, %vm248_vm4  ;;  %v1592_v34 = vld [vmem:[#allocation2 + $0x68] ss:$16 sps:$4 sm:$0xff]   ;;  %s1417_s5 = sld [smem:[#allocation6 + $0x3]]  ;;  %s1418_s8 = sld [smem:[#allocation6 + $0x2]] }
  0x5b   : > { %1514 = vset.pattern.permute.xlu1 %v1741_v23  ;;  %563 = vmatprep.subr.bf16.mxu0 %v1553_v37  ;;  %v250_v8 = vsel %vm249_vm5, %v1344_v4, 0  ;;  %v1579_v23 = vld [vmem:[#allocation2 + $0x24] ss:$16 sps:$4 sm:$0xff]   ;;  %v1595_v37 = vld [vmem:[#allocation2 + $0x80] ss:$16 sps:$4 sm:$0xff]   ;;  %s1419_s29 = sld [smem:[#allocation6 + $0x1]] }
  0x5c   : > { %288 = vperm.xlu1 %1514, %v285_v22   ;;  %606 = vmatprep.subr.bf16.mxu1 %v1555_v38  ;;  %v251_v9 = vshll.u32 %v1744_v41, %v250_v8  ;;  %v1603_v38 = vld [vmem:[#allocation2 + $0xa4] ss:$16 sps:$4 sm:$0xff]   ;;  %s1171_s27 = sld [smem:[#allocation6]]  ;;  %s218_s6 = sand.u32 1, %s1724_s16  }
  0x5d   : > { %564 = vmatpush1.bf16.msra.mxu0 %v1557_v39  ;;  %v1606_v39 = vld [vmem:[#allocation2 + $0xac] ss:$16 sps:$4 sm:$0xff]   ;;  %s1341_s10 = sshll.u32 %s218_s6, 6  ;;  %s1428_s11 = sshll.u32 %s1796_s19, 10 }
  0x5e   : > { %1517 = vset.pattern.permute.xlu0 %v1742_v32  ;;  %607 = vmatpush1.bf16.msra.mxu1 %v1558_v40  ;;  %v252_v11 = vsel %vm249_vm5, %v251_v9, 0  ;;  %v1601_v40 = vld [vmem:[#allocation2 + $0xa0] ss:$16 sps:$4 sm:$0xff]   ;;  %s2032_s12 = scalar_lea.vmem [#allocation7], %s1341_s10  ;;  %s2044_s20 = scalar_lea.hbm %s2105_s4, %s1428_s11 }
  0x5f   : > { %300 = vperm.xlu0 %1517, %v297_v28   ;;  %565 = vmatprep.subr.bf16.mxu0 %v1559_v42  ;;  %v1588_v28 = vld [vmem:[#allocation2 + $0x4c] ss:$16 sps:$4 sm:$0xff]   ;;  %v1609_v42 = vld [vmem:[#allocation2 + $0xc4] ss:$16 sps:$4 sm:$0xff]   ;;  %s1247_s13 = sshll.u32 %s2032_s12, 4  ;;  %p2118_p13 = scmp.ne.s32.totalorder %s2109_s25, 0  ;;  %s2046_s13 = int_to_ptr.vmem [resolvable:$true] %s1247_s13 }
  0x60   : > { %1516 = vset.pattern.permute.xlu1 %v1743_v35  ;;  %608 = vmatprep.subr.bf16.mxu1 %v1561_v43  ;;  %v1597_v35 = vld [vmem:[#allocation2 + $0x84] ss:$16 sps:$4 sm:$0xff]   ;;  %v1612_v43 = vld [vmem:[#allocation2 + $0xcc] ss:$16 sps:$4 sm:$0xff]  }
  0x61   : > { %312 = vperm.xlu1 %1516, %v309_v29   ;;  %566 = vmatpush1.bf16.msra.mxu0 %v1563_v45  ;;  %v1583_v29 = vld [vmem:[#allocation2 + $0x40] ss:$16 sps:$4 sm:$0xff]   ;;  %v1610_v45 = vld [vmem:[#allocation2 + $0xc8] ss:$16 sps:$4 sm:$0xff]  }
  0x62   : > { %609 = vmatpush1.bf16.msra.mxu1 %v1564_v46  ;;  %567 = vmatprep.subr.bf16.mxu0 %v1565_v47  ;;  %v1615_v46 = vld [vmem:[#allocation2 + $0xe4] ss:$16 sps:$4 sm:$0xff]   ;;  %v1618_v47 = vld [vmem:[#allocation2 + $0xec] ss:$16 sps:$4 sm:$0xff]  }
  0x63   : > { %1520 = vset.pattern.permute.xlu0 %v1744_v41  ;;  %610 = vmatprep.subr.bf16.mxu1 %v1567_v48  ;;  %v1613_v48 = vld [vmem:[#allocation2 + $0xe0] ss:$16 sps:$4 sm:$0xff]  }
  0x64   : > { %895 = vperm.xlu0 %1520, %v886_v55   ;;  %v1411_v57 = vld [vmem:[%s2103_s2 + $0x1] ss:$4 sm:$0xf] }
  0x65   : > { %315 = vperm.xlu1 %1516, %v310_v36   ;;  %568 = vmatpush1.bf16.msra.mxu0 %v1569_v49  ;;  %v1600_v36 = vld [vmem:[#allocation2 + $0x8c] ss:$16 sps:$4 sm:$0xff]   ;;  %v1616_v49 = vld [vmem:[#allocation2 + $0xe8] ss:$16 sps:$4 sm:$0xff]  }
  0x66   : > { %611 = vmatpush1.bf16.msra.mxu1 %v1570_v50  ;;  %799 = vmatprep.subr.bf16.mxu0 %v1573_v51  ;;  %v900_v51 = vshrl.u32 %v244_v61, 7 }
  0x67   : > { %842 = vmatprep.subr.bf16.mxu1 %v1576_v52  ;;  %v887_v52 = vld [vmem:[%s2103_s2] ss:$4 sm:$0xf] }
  0x68   : > { %1522 = vset.pattern.permute.xlu0 %v1745_v54 }
  0x69   : > { %1518 = vset.pattern.permute.xlu1 %v1742_v32  ;;  %v1594_v32 = vld [vmem:[#allocation2 + $0x6c] ss:$16 sps:$4 sm:$0xff]  }
  0x6a   : > { %303 = vperm.xlu1 %1518, %v298_v44   ;;  %v1607_v44 = vld [vmem:[#allocation2 + $0xc0] ss:$16 sps:$4 sm:$0xff]  }
  0x6e   : > { %1519 = vset.pattern.permute.xlu1 %v1744_v41  ;;  %v1604_v41 = vld [vmem:[#allocation2 + $0xa8] ss:$16 sps:$4 sm:$0xff]  }
  0x6f   : > { %890 = vperm.xlu1 %1519, %v885_v53  }
  0x73   : > { %1521 = vset.pattern.permute.xlu1 %v1745_v54  ;;  %v1925_v54 = vsub.s32 2, %v900_v51 }
  0x74   : > { %930 = vperm.xlu1 %1521, %v885_v53   ;;  %v1923_v53 = vsub.s32 0, %v900_v51 }
  0x76   : > { %v902_v59 = vrot.slane %v887_v52, %v1923_v53  ;;  %v941_v61 = vrot.slane %v1411_v57, %v1923_v53 }
  0x78   : > { %934 = vperm.xlu1 %1521, %v886_v55   ;;  %v1927_v55 = vsub.s32 1, %v900_v51 }
  0x7a   : > { %v945_v4 = vrot.slane %v1411_v57, %v1927_v55 }
  0x83   : > { %237 = vmin.xlane.f32.xlu0 %v236_v58 }
  0x9c   : > { %240 = vmin.xlane.f32.xlu1 %v239_v60  ;;  %v910_v60 = vrot.slane %v887_v52, %v1925_v54 }
  0xcb   : > { %v255_v62 = vpop.permute.xlu0 %254 }
  0xcc   : > { %vm259_vm6 = vcmp.eq.s32.totalorder %v245_v63, %v255_v62  ;;  %v949_v62 = vrot.slane %v1411_v57, %v1925_v54 }
  0xcd   : > { %v265_v1 = vpop.permute.xlu1 %264 }
  0xce   : > { %vm269_vm7 = vcmp.eq.s32.totalorder %v245_v63, %v265_v1 }
  0xcf   : > { %v258_v5 = vpop.permute.xlu0 %257  ;;  %vm271_vm11 = vmor %vm259_vm6, %vm269_vm7 }
  0xd0   : > { %vm260_vm8 = vcmp.eq.s32.totalorder %v245_v63, %v258_v5 }
  0xd1   : > { %v268_v6 = vpop.permute.xlu1 %267 }
  0xd2   : > { %vm270_vm9 = vcmp.eq.s32.totalorder %v245_v63, %v268_v6  ;;  %v1412_v6 = vld [vmem:[%s2103_s2 + $0x2] ss:$4 sm:$0xf] }
  0xd3   : > { %vm272_vm13 = vmor %vm260_vm8, %vm270_vm9 }
  0xd4   : > { %v277_v7 = vpop.permute.xlu0 %276 }
  0xd5   : > { %vm281_vm10 = vcmp.eq.s32.totalorder %v245_v63, %v277_v7 }
  0xd6   : > { %v280_v2 = vpop.permute.xlu1 %279  ;;  %vm283_vm15 = vmor %vm271_vm11, %vm281_vm10 }
  0xd7   : > { %vm282_vm12 = vcmp.eq.s32.totalorder %v245_v63, %v280_v2 }
  0xd8   : > { %vm284_vm1 = vmor %vm272_vm13, %vm282_vm12 }
  0xd9   : > { %v292_v10 = vpop.permute.xlu0 %291 }
  0xda   : > { %vm294_vm14 = vcmp.eq.s32.totalorder %v245_v63, %v292_v10 }
  0xdb   : > { %v289_v3 = vpop.permute.xlu1 %288  ;;  %vm296_vm3 = vmor %vm284_vm1, %vm294_vm14 }
  0xdc   : > { %vm293_vm0 = vcmp.eq.s32.totalorder %v245_v63, %v289_v3 }
  0xdd   : > { %vm295_vm5 = vmor %vm283_vm15, %vm293_vm0 }
  0xde   : > { %v301_v13 = vpop.permute.xlu0 %300 }
  0xdf   : > { %vm305_vm2 = vcmp.eq.s32.totalorder %v245_v63, %v301_v13 }
  0xe0   : > { %v313_v12 = vpop.permute.xlu1 %312  ;;  %vm307_vm6 = vmor %vm295_vm5, %vm305_vm2 }
  0xe1   : > { %v317_v14 = vand.u32 %v313_v12, %v252_v11 }
  0xe3   : > { %vm319_vm4 = vcmp.ne.s32.totalorder %v317_v14, 0  ;;  %v896_v2 = vpop.permute.xlu0 %895 }
  0xe4   : > { %v316_v15 = vpop.permute.xlu1 %315  ;;  %vm321_vm7 = vmor %vm307_vm6, %vm319_vm4 }
  0xe5   : > { %v318_v16 = vand.u32 %v316_v15, %v252_v11  ;;  %v1345_v18 = vsel %vm321_vm7, 1.0, %v1746_v56  ;;  %v980_v15 = vrot.slane %v1412_v6, %v1923_v53 }
  0xe7   : > { %vm320_vm9 = vcmp.ne.s32.totalorder %v318_v16, 0  ;;  %v988_v16 = vrot.slane %v1412_v6, %v1925_v54 }
  0xe9   : > { %v304_v17 = vpop.permute.xlu1 %303 }
  0xea   : > { %vm306_vm8 = vcmp.eq.s32.totalorder %v245_v63, %v304_v17  ;;  %v906_v63 = vrot.slane %v887_v52, %v1927_v55  ;;  %v923_v17 = vmul.f32 %v902_v59, %v896_v2 }
  0xeb   : > { %vm308_vm10 = vmor %vm296_vm3, %vm306_vm8 }
  0xec   : > { %vm322_vm11 = vmor %vm308_vm10, %vm320_vm9 }
  0xed   : > { %v1346_v19 = vsel %vm322_vm11, 1.0, %v1746_v56  ;;  %v1929_v56 = vsub.s32 3, %v900_v51 }
  0xee   : > { %v1911_v22 = vpack.c.bf16 %v1346_v19, %v1345_v18  ;;  %v891_v50 = vpop.permute.xlu1 %890  ;;  %v924_v19 = vmul.f32 %v906_v63, %v896_v2 }
  0xef   : > { %v914_v1 = vrot.slane %v887_v52, %v1929_v56  ;;  %v953_v5 = vrot.slane %v1411_v57, %v1929_v56  ;;  %v919_v8 = vmul.f32 %v902_v59, %v891_v50  ;;  %v921_v3 = vmul.f32 %v910_v60, %v891_v50 }
  0xf0   : > { %586 = vmatmul.mubr.bf16.vlgmr.msra.gmra.mrb[0].mxu0 %v1911_v22  ;;  %629 = vmatmul.mubr.bf16.vlgmr.msra.gmra.mrb[0].mxu1 %v1911_v22  ;;  %v920_v11 = vmul.f32 %v906_v63, %v891_v50 }
  0xf1   : > { %800 = vmatpush1.bf16.msra.mxu0 %v1571_v20  ;;  %843 = vmatpush1.bf16.msra.mxu1 %v1574_v21  ;;  %v922_v12 = vmul.f32 %v914_v1, %v891_v50  ;;  %v925_v20 = vmul.f32 %v910_v60, %v896_v2 }
  0xf2   : > { %801 = vmatprep.subr.bf16.mxu0 %v1579_v23  ;;  %844 = vmatprep.subr.bf16.mxu1 %v1582_v24 }
  0xf3   : > { %831 = vmatprep.mubr.bf16.mxu0 %v1738_v0  ;;  %874 = vmatprep.mubr.bf16.mxu1 %v1738_v0  ;;  %v1598_v0 = vld [vmem:[#allocation2 + $0x88] ss:$16 sps:$4 sm:$0xff]   ;;  %v931_v58 = vpop.permute.xlu1 %930 }
  0xf4   : > { %v958_v9 = vmul.f32 %v941_v61, %v931_v58  ;;  %v960_v10 = vmul.f32 %v949_v62, %v931_v58  ;;  %v959_v13 = vmul.f32 %v945_v4, %v931_v58  ;;  %v961_v14 = vmul.f32 %v953_v5, %v931_v58 }
  0xf5   : > { %802 = vmatpush1.bf16.msra.mxu0 %v1577_v25  ;;  %845 = vmatpush1.bf16.msra.mxu1 %v1580_v26  ;;  %v926_v25 = vmul.f32 %v914_v1, %v896_v2 }
  0xf6   : > { %803 = vmatprep.subr.bf16.mxu0 %v1585_v27  ;;  %846 = vmatprep.subr.bf16.mxu1 %v1588_v28  ;;  %v966_v23 = vadd.f32 %v958_v9, %v919_v8  ;;  %v968_v24 = vadd.f32 %v960_v10, %v921_v3  ;;  %v984_v27 = vrot.slane %v1412_v6, %v1927_v55 }
  0xf7   : > { %v935_v7 = vpop.permute.xlu1 %934  ;;  %v992_v28 = vrot.slane %v1412_v6, %v1929_v56 }
  0xf8   : > { %v962_v18 = vmul.f32 %v941_v61, %v935_v7  ;;  %v963_v21 = vmul.f32 %v945_v4, %v935_v7  ;;  %v965_v26 = vmul.f32 %v953_v5, %v935_v7 }
  0xf9   : > { %804 = vmatpush1.bf16.msra.mxu0 %v1583_v29  ;;  %847 = vmatpush1.bf16.msra.mxu1 %v1586_v30  ;;  %v967_v29 = vadd.f32 %v959_v13, %v920_v11  ;;  %v969_v30 = vadd.f32 %v961_v14, %v922_v12 }
  0xfa   : > { %805 = vmatprep.subr.bf16.mxu0 %v1591_v31  ;;  %848 = vmatprep.subr.bf16.mxu1 %v1594_v32  ;;  %v970_v31 = vadd.f32 %v962_v18, %v923_v17  ;;  %v971_v32 = vadd.f32 %v963_v21, %v924_v19 }
  0xfd   : > { %806 = vmatpush1.bf16.msra.mxu0 %v1589_v33  ;;  %849 = vmatpush1.bf16.msra.mxu1 %v1592_v34  ;;  %v997_v34 = vadd.f32 %v980_v15, %v966_v23 }
  0xfe   : > { %807 = vmatprep.subr.bf16.mxu0 %v1597_v35  ;;  %850 = vmatprep.subr.bf16.mxu1 %v1600_v36  ;;  %v999_v35 = vadd.f32 %v988_v16, %v968_v24  ;;  %v973_v36 = vadd.f32 %v965_v26, %v926_v25 }
 0x101   : > { %808 = vmatpush1.bf16.msra.mxu0 %v1595_v37  ;;  %851 = vmatpush1.bf16.msra.mxu1 %v1598_v0  ;;  %v998_v37 = vadd.f32 %v984_v27, %v967_v29  ;;  %v1000_v0 = vadd.f32 %v992_v28, %v969_v30 }
 0x102   : > { %809 = vmatprep.subr.bf16.mxu0 %v1603_v38  ;;  %852 = vmatprep.subr.bf16.mxu1 %v1606_v39  ;;  %v1001_v38 = vadd.f32 %v980_v15, %v970_v31  ;;  %v1002_v39 = vadd.f32 %v984_v27, %v971_v32  ;;  %v1054_v27 = vstv %s1413_s22  ;;  %s2060_s22 = scalar_lea.sflag [#allocation4], %s218_s6 }
 0x105   : > { %810 = vmatpush1.bf16.msra.mxu0 %v1601_v40  ;;  %853 = vmatpush1.bf16.msra.mxu1 %v1604_v41  ;;  %v1005_v41 = vmul.f32 0.15915494, %v997_v34 }
 0x106   : > { %811 = vmatprep.subr.bf16.mxu0 %v1609_v42  ;;  %854 = vmatprep.subr.bf16.mxu1 %v1612_v43  ;;  %v1007_v42 = vmul.f32 0.15915494, %v999_v35  ;;  %v1004_v43 = vadd.f32 %v992_v28, %v973_v36 }
 0x108   : > { %v1015_v50 = vadd.f32 0.5, %v1007_v42  ;;  %v1012_v51 = vmul.f32 0.15915494, %v1004_v43 }
 0x109   : > { %812 = vmatpush1.bf16.msra.mxu0 %v1607_v44  ;;  %855 = vmatpush1.bf16.msra.mxu1 %v1610_v45  ;;  %v1006_v44 = vmul.f32 0.15915494, %v998_v37  ;;  %v1008_v45 = vmul.f32 0.15915494, %v1000_v0 }
 0x10a   : > { %813 = vmatprep.subr.bf16.mxu0 %v1615_v46  ;;  %856 = vmatprep.subr.bf16.mxu1 %v1618_v47  ;;  %v1009_v46 = vmul.f32 0.15915494, %v1001_v38  ;;  %v1010_v47 = vmul.f32 0.15915494, %v1002_v39  ;;  %v1020_v63 = vadd.f32 0.5, %v1012_v51 }
 0x10b   : > { %v1014_v52 = vadd.f32 0.5, %v1006_v44  ;;  %v1016_v57 = vadd.f32 0.5, %v1008_v45 }
 0x10c   : > { %v1017_v58 = vadd.f32 0.5, %v1009_v46  ;;  %v1018_v59 = vadd.f32 0.5, %v1010_v47  ;;  %v1028_v3 = vfloor.f32 %v1020_v63 }
 0x10d   : > { %814 = vmatpush1.bf16.msra.mxu0 %v1613_v48  ;;  %857 = vmatpush1.bf16.msra.mxu1 %v1616_v49  ;;  %v1013_v49 = vadd.f32 0.5, %v1005_v41  ;;  %v1022_v1 = vfloor.f32 %v1014_v52  ;;  %v1024_v4 = vfloor.f32 %v1016_v57 }
 0x10e   : > { %v1025_v5 = vfloor.f32 %v1017_v58  ;;  %v1026_v6 = vfloor.f32 %v1018_v59 }
 0x10f   : > { %v1021_v61 = vfloor.f32 %v1013_v49  ;;  %v1030_v9 = vmul.f32 6.2831855, %v1022_v1  ;;  %v1032_v10 = vmul.f32 6.2831855, %v1024_v4 }
 0x110   : > { %832 = vmatmul.mubr.bf16.vlgmr.msra.gmra.mrb[0].mxu0 %v1911_v22  ;;  %875 = vmatmul.mubr.bf16.vlgmr.msra.gmra.mrb[0].mxu1 %v1911_v22  ;;  %v964_v22 = vmul.f32 %v949_v62, %v935_v7  ;;  %v1023_v62 = vfloor.f32 %v1015_v50  ;;  %v1033_v11 = vmul.f32 6.2831855, %v1025_v5  ;;  %v1034_v12 = vmul.f32 6.2831855, %v1026_v6 }
 0x111   : > { %v1029_v7 = vmul.f32 6.2831855, %v1021_v61  ;;  %v1038_v17 = vsub.f32 %v998_v37, %v1030_v9  ;;  %v1040_v18 = vsub.f32 %v1000_v0, %v1032_v10  ;;  %v1082_v50 = vstv %s1415_s28  ;;  %s1747_s28 = smov [#allocation7]  }
 0x112   : > { %v972_v33 = vadd.f32 %v964_v22, %v925_v20  ;;  %v1031_v8 = vmul.f32 6.2831855, %v1023_v62  ;;  %v1041_v19 = vsub.f32 %v1001_v38, %v1033_v11  ;;  %v1042_v20 = vsub.f32 %v1002_v39, %v1034_v12 }
 0x113   : > { %v1037_v14 = vsub.f32 %v997_v34, %v1029_v7  ;;  %v1953_v25 = vmul.f32 %v1038_v17, %v1038_v17  ;;  %v1955_v26 = vmul.f32 %v1040_v18, %v1040_v18  ;;  %v1064_v34 = vstv %s1414_s23  ;;  %s1662_s23 = scalar_lea.vmem %s2046_s13, 1024 }
 0x114   : > { %v1003_v40 = vadd.f32 %v988_v16, %v972_v33  ;;  %v1039_v15 = vsub.f32 %v999_v35, %v1031_v8  ;;  %v1036_v16 = vmul.f32 6.2831855, %v1028_v3  ;;  %v1957_v28 = vmul.f32 %v1041_v19, %v1041_v19  ;;  %p1663_p11 = scmp.ne.s32.totalorder %s2046_s13, %s1662_s23 }
 0x115   : > { %v1949_v22 = vmul.f32 %v1037_v14, %v1037_v14  ;;  %v1959_v29 = vmul.f32 %v1042_v20, %v1042_v20  ;;  %v1056_v35 = vmul.f32 %v1054_v27, %v1953_v25  ;;  %v1058_v36 = vmul.f32 %v1054_v27, %v1955_v26 }
 0x116   : > { %v1011_v48 = vmul.f32 0.15915494, %v1003_v40  ;;  %v1951_v23 = vmul.f32 %v1039_v15, %v1039_v15  ;;  %v1044_v24 = vsub.f32 %v1004_v43, %v1036_v16  ;;  %v1059_v37 = vmul.f32 %v1054_v27, %v1957_v28  ;;  %p1664_p1 = pnand %p1663_p11, %p2118_p13 }
 0x117   : > { %v1055_v32 = vmul.f32 %v1054_v27, %v1949_v22  ;;  %v1060_v38 = vmul.f32 %v1054_v27, %v1959_v29  ;;  %v1066_v42 = vadd.f32 %v1064_v34, %v1056_v35  ;;  %v1068_v43 = vadd.f32 %v1064_v34, %v1058_v36 }
 0x118   : > { %v1019_v60 = vadd.f32 0.5, %v1011_v48  ;;  %v1963_v31 = vmul.f32 %v1044_v24, %v1044_v24  ;;  %v1057_v33 = vmul.f32 %v1054_v27, %v1951_v23  ;;  %v1069_v44 = vadd.f32 %v1064_v34, %v1059_v37  ;;  %p1665_p6 = pneg %p1664_p1 }
 0x119   : > { %v1065_v39 = vadd.f32 %v1064_v34, %v1055_v32  ;;  %v1070_v46 = vadd.f32 %v1064_v34, %v1060_v38  ;;  %v1074_v51 = vmul.f32 %v1066_v42, %v1953_v25  ;;  %v1076_v52 = vmul.f32 %v1068_v43, %v1955_v26 }
 0x11a   : > { %v1027_v2 = vfloor.f32 %v1019_v60  ;;  %v1062_v41 = vmul.f32 %v1054_v27, %v1963_v31  ;;  %v1077_v57 = vmul.f32 %v1069_v44, %v1957_v28  ;;  %v1100_v3 = vstv %s1416_s30  ;;  %s1666_s30 = sshll.u32 %s1747_s28, 4  ;;  %s1667_s30 = int_to_ptr.vmem [resolvable:$false] %s1666_s30 }
 0x11b   : > { %v1073_v47 = vmul.f32 %v1065_v39, %v1949_v22  ;;  %v1078_v59 = vmul.f32 %v1070_v46, %v1959_v29  ;;  %v1084_v63 = vadd.f32 %v1082_v50, %v1074_v51  ;;  %v1086_v1 = vadd.f32 %v1082_v50, %v1076_v52  ;;  %p1669_p5 = scmp.lt.s32.totalorder %s2046_s13, %s1667_s30 }
 0x11c   : > { %v1035_v13 = vmul.f32 6.2831855, %v1027_v2  ;;  %v1072_v49 = vadd.f32 %v1064_v34, %v1062_v41  ;;  %v1087_v4 = vadd.f32 %v1082_v50, %v1077_v57 }
 0x11d   : > { %v1083_v60 = vadd.f32 %v1082_v50, %v1073_v47  ;;  %v1088_v6 = vadd.f32 %v1082_v50, %v1078_v59  ;;  %v1092_v9 = vmul.f32 %v1084_v63, %v1953_v25  ;;  %v1094_v10 = vmul.f32 %v1086_v1, %v1955_v26 }
 0x11e   : > { %v1043_v21 = vsub.f32 %v1003_v40, %v1035_v13  ;;  %v1067_v40 = vadd.f32 %v1064_v34, %v1057_v33  ;;  %v1080_v62 = vmul.f32 %v1072_v49, %v1963_v31  ;;  %v1095_v11 = vmul.f32 %v1087_v4, %v1957_v28 }
 0x11f   : > { %v1091_v2 = vmul.f32 %v1083_v60, %v1949_v22  ;;  %v1096_v13 = vmul.f32 %v1088_v6, %v1959_v29  ;;  %v1102_v17 = vadd.f32 %v1100_v3, %v1092_v9  ;;  %v1104_v18 = vadd.f32 %v1100_v3, %v1094_v10 }
 0x120   : > { %v1961_v30 = vmul.f32 %v1043_v21, %v1043_v21  ;;  %v1075_v48 = vmul.f32 %v1067_v40, %v1951_v23  ;;  %v1090_v8 = vadd.f32 %v1082_v50, %v1080_v62  ;;  %v1105_v19 = vadd.f32 %v1100_v3, %v1095_v11 }
 0x121   : > { %v1101_v14 = vadd.f32 %v1100_v3, %v1091_v2  ;;  %v1106_v21 = vadd.f32 %v1100_v3, %v1096_v13  ;;  %v1118_v33 = vstv %s1417_s5  ;;  %v1112_v35 = vmul.f32 %v1104_v18, %v1955_v26  ;;  %s1668_s5 = scalar_lea.vmem %s1667_s30, 2048 }
 0x122   : > { %v1061_v0 = vmul.f32 %v1054_v27, %v1961_v30  ;;  %v1085_v61 = vadd.f32 %v1082_v50, %v1075_v48  ;;  %v1098_v16 = vmul.f32 %v1090_v8, %v1963_v31  ;;  %v1113_v36 = vmul.f32 %v1105_v19, %v1957_v28  ;;  %p1670_p9 = scmp.lt.s32.totalorder %s1668_s5, %s1662_s23 }
 0x123   : > { %v1109_v24 = vmul.f32 %v1101_v14, %v1949_v22  ;;  %v1122_v42 = vadd.f32 %v1118_v33, %v1112_v35  ;;  %v1136_v49 = vstv %s1418_s8  ;;  %v1154_v8 = vstv %s1419_s29  ;;  %v1420_v35 = vld [vmem:[%s2103_s2 + $0x3] ss:$4 sm:$0xf] }
 0x124   : > { %v1071_v45 = vadd.f32 %v1064_v34, %v1061_v0  ;;  %v1093_v7 = vmul.f32 %v1085_v61, %v1951_v23  ;;  %v1108_v32 = vadd.f32 %v1100_v3, %v1098_v16  ;;  %v1110_v34 = vmul.f32 %v1102_v17, %v1953_v25  ;;  %p1671_p10 = por %p1670_p9, %p1669_p5 }
 0x125   : > { %v1114_v0 = vmul.f32 %v1106_v21, %v1959_v29  ;;  %v1119_v38 = vadd.f32 %v1118_v33, %v1109_v24  ;;  %v1123_v43 = vadd.f32 %v1118_v33, %v1113_v36  ;;  %v1130_v51 = vmul.f32 %v1122_v42, %v1955_v26 }
 0x126   : > { %v1079_v58 = vmul.f32 %v1071_v45, %v1961_v30  ;;  %v1103_v15 = vadd.f32 %v1100_v3, %v1093_v7  ;;  %v1116_v40 = vmul.f32 %v1108_v32, %v1963_v31  ;;  %v1120_v41 = vadd.f32 %v1118_v33, %v1110_v34  ;;  %p1672_p2 = pnand %p1671_p10, %p1665_p6 }
 0x127   : > { %v1124_v45 = vadd.f32 %v1118_v33, %v1114_v0  ;;  %v1127_v46 = vmul.f32 %v1119_v38, %v1949_v22  ;;  %v1131_v52 = vmul.f32 %v1123_v43, %v1957_v28  ;;  %v1140_v63 = vadd.f32 %v1136_v49, %v1130_v51 }
 0x128   : > { %v1089_v5 = vadd.f32 %v1082_v50, %v1079_v58  ;;  %v1111_v27 = vmul.f32 %v1103_v15, %v1951_v23  ;;  %v1126_v48 = vadd.f32 %v1118_v33, %v1116_v40  ;;  %v1128_v50 = vmul.f32 %v1120_v41, %v1953_v25 }
 0x129   : > { %v1132_v58 = vmul.f32 %v1124_v45, %v1959_v29  ;;  %v1137_v59 = vadd.f32 %v1136_v49, %v1127_v46  ;;  %v1141_v1 = vadd.f32 %v1136_v49, %v1131_v52  ;;  %v1148_v9 = vmul.f32 %v1140_v63, %v1955_v26  ;;  %v241_v42 = vpop.xlane.xlu1 %240 }
 0x12a   : > { %v1097_v12 = vmul.f32 %v1089_v5, %v1961_v30  ;;  %v1121_v39 = vadd.f32 %v1118_v33, %v1111_v27  ;;  %v1134_v61 = vmul.f32 %v1126_v48, %v1963_v31  ;;  %v1138_v62 = vadd.f32 %v1136_v49, %v1128_v50 }
 0x12b   : > { %v1142_v5 = vadd.f32 %v1136_v49, %v1132_v58  ;;  %v1145_v6 = vmul.f32 %v1137_v59, %v1949_v22  ;;  %v1149_v10 = vmul.f32 %v1141_v1, %v1957_v28  ;;  %v1158_v17 = vadd.f32 %v1154_v8, %v1148_v9 }
 0x12c   : > { %v1107_v20 = vadd.f32 %v1100_v3, %v1097_v12  ;;  %v1129_v47 = vmul.f32 %v1121_v39, %v1951_v23  ;;  %v1144_v7 = vadd.f32 %v1136_v49, %v1134_v61  ;;  %v1146_v3 = vmul.f32 %v1138_v62, %v1953_v25 }
 0x12d   : > { %v1150_v12 = vmul.f32 %v1142_v5, %v1959_v29  ;;  %v1155_v13 = vadd.f32 %v1154_v8, %v1145_v6  ;;  %v1159_v18 = vadd.f32 %v1154_v8, %v1149_v10  ;;  %v1172_v32 = vstv %s1171_s27 }
 0x12e   : > { %v1115_v37 = vmul.f32 %v1107_v20, %v1961_v30  ;;  %v1139_v60 = vadd.f32 %v1136_v49, %v1129_v47  ;;  %v1152_v15 = vmul.f32 %v1144_v7, %v1963_v31  ;;  %v1156_v16 = vadd.f32 %v1154_v8, %v1146_v3 }
 0x12f   : > { %v1160_v20 = vadd.f32 %v1154_v8, %v1150_v12  ;;  %v1163_v21 = vmul.f32 %v1155_v13, %v1949_v22  ;;  %v1166_v34 = vmul.f32 %v1158_v17, %v1955_v26  ;;  %v1167_v36 = vmul.f32 %v1159_v18, %v1957_v28 }
 0x130   : > { %v1125_v44 = vadd.f32 %v1118_v33, %v1115_v37  ;;  %v1147_v2 = vmul.f32 %v1139_v60, %v1951_v23  ;;  %v1162_v27 = vadd.f32 %v1154_v8, %v1152_v15  ;;  %v1164_v33 = vmul.f32 %v1156_v16, %v1953_v25  ;;  %v238_v37 = vpop.xlane.xlu0 %237 }
 0x131   : > { %v1173_v0 = vadd.f32 %v1172_v32, %v1163_v21  ;;  %v1176_v40 = vadd.f32 %v1172_v32, %v1166_v34  ;;  %v1199_v26 = vrot.slane %v1420_v35, %v1923_v53  ;;  %v1207_v41 = vrot.slane %v1420_v35, %v1925_v54 }
 0x132   : > { %v1133_v57 = vmul.f32 %v1125_v44, %v1961_v30  ;;  %v1157_v14 = vadd.f32 %v1154_v8, %v1147_v2  ;;  %v1170_v39 = vmul.f32 %v1162_v27, %v1963_v31  ;;  %v1174_v25 = vadd.f32 %v1172_v32, %v1164_v33 }
 0x133   : > { %v1203_v44 = vrot.slane %v1420_v35, %v1927_v55  ;;  %vm242_vm12 = vcmp.gt.f32.partialorder %v238_v37, 0.0  ;;  %vm243_vm13 = vcmp.gt.f32.partialorder %v241_v42, 0.0 }
 0x134   : > { %v1143_v4 = vadd.f32 %v1136_v49, %v1133_v57  ;;  %v1165_v24 = vmul.f32 %v1157_v14, %v1951_v23  ;;  %v1168_v23 = vmul.f32 %v1160_v20, %v1959_v29  ;;  %v1177_v29 = vadd.f32 %v1172_v32, %v1167_v36 }
 0x136   : > { %v1151_v11 = vmul.f32 %v1143_v4, %v1961_v30  ;;  %v1175_v38 = vadd.f32 %v1172_v32, %v1165_v24  ;;  %v1178_v49 = vadd.f32 %v1172_v32, %v1168_v23 }
 0x138   : > { %v1161_v19 = vadd.f32 %v1154_v8, %v1151_v11 }
 0x13a   : > { %v1169_v22 = vmul.f32 %v1161_v19, %v1961_v30  ;;  %v1211_v30 = vrot.slane %v1420_v35, %v1929_v56  ;;  %v1180_v56 = vadd.f32 %v1172_v32, %v1170_v39 }
 0x13c   : > { %v1179_v48 = vadd.f32 %v1172_v32, %v1169_v22 }
 0x1e3   : > { %v833_v28 = vpop.f32.mrb[0].mxu0  ;;  %v876_v43 = vpop.f32.mrb[0].mxu1 }
 0x1e4   : > { %v1181_v45 = vadd.f32 %v1173_v0, %v833_v28  ;;  %v1183_v46 = vadd.f32 %v1175_v38, %v876_v43  ;;  %v835_v47 = vpop.f32.mrb[1].mxu0  ;;  %v878_v31 = vpop.f32.mrb[1].mxu1 }
 0x1e5   : > { %v1182_v53 = vadd.f32 %v1174_v25, %v835_v47  ;;  %v1184_v54 = vadd.f32 %v1176_v40, %v878_v31  ;;  %v837_v55 = vpop.f32.mrb[2].mxu0  ;;  %v880_v50 = vpop.f32.mrb[2].mxu1 }
 0x1e6   : > { %v1216_v51 = vsel %vm242_vm12, %v1199_v26, %v1181_v45  ;;  %v1218_v52 = vsel %vm242_vm12, %v1207_v41, %v1183_v46  ;;  %v1185_v57 = vadd.f32 %v1177_v29, %v837_v55  ;;  %v1187_v58 = vadd.f32 %v1179_v48, %v880_v50  ;;  %v839_v59 = vpop.f32.mrb[3].mxu0  ;;  %v882_v60 = vpop.f32.mrb[3].mxu1 }
 0x1e7   : > { %v1217_v61 = vsel %vm242_vm12, %v1203_v44, %v1182_v53  ;;  %v1219_v62 = vsel %vm242_vm12, %v1211_v30, %v1184_v54  ;;  %1224 = vst [vmem:[%s2032_s12] sm:$0xff] %v1216_v51  ;;  %1226 = vst [vmem:[%s2032_s12 + $0x10] sm:$0xff] %v1218_v52  ;;  %v1186_v63 = vadd.f32 %v1178_v49, %v839_v59 }
 0x1e8   : > { %v1188_v1 = vadd.f32 %v1180_v56, %v882_v60  ;;  %1225 = vst [vmem:[%s2032_s12 + $0x8] sm:$0xff] %v1217_v61  ;;  %1227 = vst [vmem:[%s2032_s12 + $0x18] sm:$0xff] %v1219_v62  ;;  %v1220_v4 = vsel %vm243_vm13, %v1199_v26, %v1185_v57  ;;  %v1222_v5 = vsel %vm243_vm13, %v1207_v41, %v1187_v58 }
 0x1e9   : > { %v1221_v6 = vsel %vm243_vm13, %v1203_v44, %v1186_v63  ;;  %1228 = vst [vmem:[%s2032_s12 + $0x20] sm:$0xff] %v1220_v4  ;;  %1230 = vst [vmem:[%s2032_s12 + $0x30] sm:$0xff] %v1222_v5 }
 0x1ea   : > { %v1223_v2 = vsel %vm243_vm13, %v1211_v30, %v1188_v1  ;;  %1229 = vst [vmem:[%s2032_s12 + $0x28] sm:$0xff] %v1221_v6 }
 0x1eb   : > { %1231 = vst [vmem:[%s2032_s12 + $0x38] sm:$0xff] %v1223_v2 }
 0x1ec   : > { %1675 = shalt.err (!%p1672_p2)
}
 0x1ed   : > { %s1676_s8 = scalar_lea.hbm %s2044_s20, 1024  ;;  %s1680_s6 = scalar_lea.hbm %s2105_s4, 2048 }
 0x1ee   : > { %p1677_p3 = scmp.ne.s32.totalorder %s2044_s20, %s1676_s8  ;;  %p1681_p7 = scmp.lt.u32.totalorder %s2044_s20, %s2105_s4 }
 0x1ef   : > { %p1682_p8 = scmp.lt.u32.totalorder %s1680_s6, %s1676_s8  ;;  %p1684_p11 = scmp.lt.u32.totalorder %s1676_s8, %s2044_s20 }
 0x1f0   : > { %p1678_p4 = pnand %p1677_p3, %p2118_p13 }
 0x1f1   : > { %p1683_p12 = por %p1682_p8, %p1681_p7 }
 0x1f2   : > { %p1679_p0 = pneg %p1678_p4 }
 0x1f3   : > { %p1685_p1 = por %p1684_p11, %p1683_p12 }
 0x1f5   : > { %p1686_p6 = pnand %p1685_p1, %p1679_p0 }
 0x1f7   : > { %1689 = shalt.err (!%p1686_p6)
}
 0x1f8   : > { %s1748_s10 = smov 512   ;;  %s1749_s11 = smov 32  }
 0x1f9   : > { %1445 = dma.vmem_to_hbm [thread:$0]  (%p2118_p13), %s2046_s13, 1024, %s2044_s20, %s2060_s22, %s1748_s10, %s1748_s10, %s1749_s11  }
 0x1fa PF: > { %p1462_p5 = scmp.ge.s32.totalorder %s1732_s18, 2  ;;  %s1262_s12 = sand.u32 1, %s1720_s15  }
 0x1fb   : > { %p2119_p9 = scmp.ne.s32.totalorder %s2110_s26, 0  ;;  %s1263_s19 = scalar_lea.sflag [#allocation4], %s1262_s12 }
 0x1fd   : > { %p1455_p10 = pnand %p1462_p5, %p2119_p9 }
 0x1ff   : > { %1715 = dma.done.wait (!%p1455_p10), %s1263_s19, 1024  }
 0x200   : > { %1717 = vsyncadd (!%p1455_p10), %s1263_s19, 4294966272  ;;  %p16_p2 = scmp.ge.s32.totalorder %s1800_s21, 4   ;;  %s2120_s15 = smov %s1724_s16 }
 0x201   : > { %s2121_s16 = smov %s1728_s17  ;;  %s2122_s17 = smov %s1811_s24 }
 0x202   : > { %s2123_s18 = smov %s1800_s21  ;;  %18 = sbr.rel (!%p16_p2) target bundleno = 5 (0x5), region = 85 }
 0x209   :  { %1268 = vsyncpa [#allocation3], 1 }
 0x20a   :  { %1270 = vsyncpa [#allocation3 + $0x1], 1 }
 0x20b   :  { %1271 = vsyncpa [#allocation4], 1 }
 0x20c   :  { %1273 = vsyncpa [#allocation4 + $0x1], 1 }
 0x20d   :  { %1274 = vsyncpa [#allocation5], 1 }
 0x20e   :  { %1276 = vsyncpa [#allocation5 + $0x1], 1 }

</bundles_post_ra>
